<compile_context>
chip_gen: v7x
topology: tpu7x:2x2x1
jax: 0.10.0
libtpu: 0.0.40
codegen_flags: <defaults>
</compile_context>

<pallas_src>
import functools
import math

import numpy as np
import jax
import jax.numpy as jnp
from jax import lax
from jax.experimental import pallas as pl
from jax.experimental.pallas import tpu as pltpu


def _round_up(x, m):
    return (x + m - 1) // m * m


def _pad_axis(x, size, axis):
    pad = size - x.shape[axis]
    if pad <= 0:
        return x
    widths = [(0, 0)] * x.ndim
    widths[axis] = (0, pad)
    return jnp.pad(x, widths)


def _choose_tiles(B, N, Dp, Cp, x_item, w_item, vmem_limit_bytes,
                  max_block_b=64):
    """Pick (bt, tn): slides per step and patches per reduction step.

    Footprint accounting counts the double-buffered x tiles for BOTH branches
    plus ~4 same-sized f32 in-kernel intermediates (x_f32 / x_norm / proj /
    proj_norm), the accumulator scratch and the (double-buffered) constants.
    """
    budget = (vmem_limit_bytes * 3) // 4          # headroom for the compiler
    fixed = 2 * Dp * Dp * w_item + 2 * Dp * 4 + 2 * Dp * Cp * 4  # W.T, b, descc

    def fits(bt, tn):
        x_tiles = 2 * 2 * bt * tn * Dp * x_item   # x_s + x_l, double-buffered
        interm = 4 * bt * tn * Dp * 4             # f32 elementwise slabs
        other = bt * Dp * 4 + 2 * bt * Cp * 4     # acc scratch + out tile
        return fixed + x_tiles + interm + other <= budget

    # N tile: multiple-of-8 divisors of N (full N if N is not 8-aligned).
    if N % 8 == 0:
        tn_cands = sorted((d for d in range(8, N + 1, 8) if N % d == 0),
                          reverse=True)
        tn_cands = [d for d in tn_cands if d <= 256] or [min(tn_cands)]
    else:
        tn_cands = [N]

    # B tile: full sublanes (multiple of 8) unless one block covers all of B.
    if B <= 8:
        bt_cands = [B]
    else:
        hi = min(max_block_b, _round_up(B, 8))
        hi = max(8, (hi // 8) * 8)
        bt_cands = list(range(hi, 7, -8))

    for tn in tn_cands:
        for bt in bt_cands:
            if fits(bt, tn):
                return bt, tn
    return bt_cands[-1], tn_cands[-1]             # smallest combo; last resort


# --------------------------------------------------------------------------
# Pallas kernel: grid = (B/bt, N/tn); small/large branches as two sequential
# passes sharing W.T / bias; per-slide row-sum accumulated in VMEM scratch.
# --------------------------------------------------------------------------
def _ver2a_kernel(xs_ref, xl_ref, wt_ref, b_ref, descc_ref, out_ref, acc_ref,
                  *, mxu_dtype):
    eps2 = jnp.float32(1e-24)                     # (1e-12)^2, F.normalize eps
    bt, tn, d = xs_ref.shape

    @pl.when(pl.program_id(1) == 0)
    def _init():
        acc_ref[...] = jnp.zeros_like(acc_ref)

    def branch_rowsum(x_tile):
        # x_tile: (bt, tn, d) in the (possibly bf16) input dtype.
        x = x_tile.reshape(bt * tn, d).astype(jnp.float32)
        inv = lax.rsqrt(jnp.maximum(jnp.sum(x * x, axis=-1, keepdims=True),
                                    eps2))
        xn = (x * inv).astype(mxu_dtype)          # L2-normalized, MXU operand
        proj = jnp.dot(xn, wt_ref[...],
                       preferred_element_type=jnp.float32) + b_ref[...]
        pinv = lax.rsqrt(jnp.maximum(
            jnp.sum(proj * proj, axis=-1, keepdims=True), eps2))
        projn = proj * pinv                       # (bt*tn, d) f32
        return jnp.sum(projn.reshape(bt, tn, d), axis=1)   # (bt, d)

    # Two sequential passes (no in-VMEM concat copy; smaller live set).
    acc_ref[...] += branch_rowsum(xs_ref[...])
    acc_ref[...] += branch_rowsum(xl_ref[...])

    @pl.when(pl.program_id(1) == pl.num_programs(1) - 1)
    def _finalize():
        # descc already folds desc_feats.T @ group_mat and the 1/(2N) mean.
        out_ref[...] = jnp.dot(acc_ref[...], descc_ref[...],
                               preferred_element_type=jnp.float32)


@functools.partial(jax.jit, static_argnames=("mxu_dtype", "max_block_b"))
def ver2a_forward(x_s, x_l, W, b, desc_feats, group_mat,
                  mxu_dtype=jnp.bfloat16, max_block_b=64):
    """x_s, x_l: (B, N, D) f32.  W: (D, D) torch-style Linear weight (out, in).
    b: (D,).  desc_feats: (T, D) L2-normalized description text features.
    group_mat: (T, C) per-class description-averaging matrix."""
    B, N, D = x_s.shape
    T, C = group_mat.shape

    Dp = _round_up(D, 128)
    Cp = _round_up(C, 128)

    # Perf path DMAs inputs in bf16 (half the HBM traffic / tile VMEM); the
    # strict f32 verification path keeps f32 end to end.
    x_dtype = jnp.float32 if mxu_dtype == jnp.float32 else jnp.bfloat16
    x_item = 4 if x_dtype == jnp.float32 else 2
    w_item = 4 if mxu_dtype == jnp.float32 else 2

    # 32 MiB scoped VMEM: safe on v5e/v6e/v7x (raise of v5e's 16 MiB default).
    vmem_limit = 32 * 1024 * 1024
    bt, tn = _choose_tiles(B, N, Dp, Cp, x_item, w_item, vmem_limit,
                           max_block_b=max_block_b)
    Bp = _round_up(B, bt)                         # pad B with zero slides

    # Algebraic fold: grouped per-class mean over descriptions AND the 1/(2N)
    # patch/branch mean collapse into a single (D, C) matrix applied after the
    # per-slide row-sum.
    descc = (desc_feats.T @ group_mat) * (1.0 / (2.0 * N))

    def prep_x(x):
        # Cast first so the (jit-fused) padded copy is written at half width.
        x = x.astype(x_dtype)
        x = _pad_axis(x, Dp, 2)
        x = _pad_axis(x, Bp, 0)
        return x

    xs_p = prep_x(x_s)
    xl_p = prep_x(x_l)
    wt_p = _pad_axis(_pad_axis(W.T, Dp, 0), Dp, 1).astype(mxu_dtype)
    b_p = _pad_axis(b.reshape(1, D), Dp, 1).astype(jnp.float32)
    descc_p = _pad_axis(_pad_axis(descc, Dp, 0), Cp, 1).astype(jnp.float32)

    grid = (Bp // bt, N // tn)
    kernel = functools.partial(_ver2a_kernel, mxu_dtype=mxu_dtype)

    # TODO(synk): single-buffer the constant W.T/bias/descc blocks via
    # pipeline_mode=pl.Buffered(1) once confirmed on the target jax build.
    logits_pad = pl.pallas_call(
        kernel,
        out_shape=jax.ShapeDtypeStruct((Bp, Cp), jnp.float32),
        grid_spec=pltpu.PrefetchScalarGridSpec(
            num_scalar_prefetch=0,
            grid=grid,
            in_specs=[
                pl.BlockSpec((bt, tn, Dp), lambda i, k: (i, k, 0)),   # x_s
                pl.BlockSpec((bt, tn, Dp), lambda i, k: (i, k, 0)),   # x_l
                pl.BlockSpec((Dp, Dp), lambda i, k: (0, 0)),          # W.T
                pl.BlockSpec((1, Dp), lambda i, k: (0, 0)),           # bias
                pl.BlockSpec((Dp, Cp), lambda i, k: (0, 0)),          # desc/grp
            ],
            out_specs=pl.BlockSpec((bt, Cp), lambda i, k: (i, 0)),    # logits
            scratch_shapes=[pltpu.VMEM((bt, Dp), jnp.float32)],       # acc
        ),
        compiler_params=pltpu.CompilerParams(
            dimension_semantics=("parallel", "arbitrary"),
            vmem_limit_bytes=vmem_limit),
    )(xs_p, xl_p, wt_p, b_p, descc_p)

    logits = logits_pad[:B, :C]
    # TODO(synk): reference forward references an undefined `logits`; we use
    # the mean of the small/large slide logits (== mean over the 2N patches).
    probs = jax.nn.softmax(logits, axis=-1)
    y_hat = jnp.argmax(probs, axis=-1)
    return probs, y_hat


# --------------------------------------------------------------------------
# Plain-JAX reference (for verification only)
# --------------------------------------------------------------------------
def _ref_forward(x_s, x_l, W, b, desc_feats, group_mat):
    def l2norm(x):
        n = jnp.sqrt(jnp.sum(x * x, axis=-1, keepdims=True))
        return x / jnp.maximum(n, 1e-12)

    def branch(x):
        xp = l2norm(l2norm(x) @ W.T + b)
        ld = xp @ desc_feats.T              # (B, N, T)
        cs = ld @ group_mat                 # (B, N, C)  grouped desc means
        return cs.mean(axis=1)              # (B, C)

    logits = 0.5 * (branch(x_s) + branch(x_l))
    probs = jax.nn.softmax(logits, axis=1)
    return probs, jnp.argmax(probs, axis=1)


# --------------------------------------------------------------------------
if __name__ == "__main__":
    B, N, D = 2, 8, 32                 # slides, patches/slide, feat_dim
    desc_counts = [2, 3, 1]            # descriptions per class
    C = len(desc_counts)
    T = sum(desc_counts)

    key = jax.random.PRNGKey(0)
    k1, k2, k3, k4, k5 = jax.random.split(key, 5)

    x_s = jax.random.normal(k1, (B, N, D), jnp.float32)
    x_l = jax.random.normal(k2, (B, N, D), jnp.float32)

    # visual_proj: nn.Linear(D, D)  (deterministic synthetic init)
    W = jax.random.normal(k3, (D, D), jnp.float32) / math.sqrt(D)
    b = 0.01 * jax.random.normal(k4, (D,), jnp.float32)

    # desc_text_features: (T, D), L2-normalized rows (like encode_text output)
    desc_raw = jax.random.normal(k5, (T, D), jnp.float32)
    desc_feats = desc_raw / jnp.linalg.norm(desc_raw, axis=-1, keepdims=True)

    # grouping matrix: class c averages its description slice
    g = np.zeros((T, C), np.float32)
    start = 0
    for c, cnt in enumerate(desc_counts):
        g[start:start + cnt, c] = 1.0 / cnt
        start += cnt
    group_mat = jnp.asarray(g)

    ref_prob, ref_hat = _ref_forward(x_s, x_l, W, b, desc_feats, group_mat)

    # Strict check: f32 path (differences only from fp summation / rsqrt).
    y_prob32, y_hat32 = ver2a_forward(x_s, x_l, W, b, desc_feats, group_mat,
                                      mxu_dtype=jnp.float32)
    jax.block_until_ready((y_prob32, y_hat32))
    assert np.allclose(np.asarray(y_prob32), np.asarray(ref_prob),
                       atol=1e-4, rtol=1e-4), "Y_prob mismatch (f32 path)"
    assert np.array_equal(np.asarray(y_hat32), np.asarray(ref_hat)), \
        "Y_hat mismatch (f32 path)"

    # Perf path: bf16 inputs + bf16 MXU operands, f32 accumulate.
    y_prob16, y_hat16 = ver2a_forward(x_s, x_l, W, b, desc_feats, group_mat)
    jax.block_until_ready((y_prob16, y_hat16))
    assert np.allclose(np.asarray(y_prob16), np.asarray(ref_prob),
                       atol=2e-2, rtol=2e-2), "Y_prob mismatch (bf16 path)"
    # Y_hat is only asserted on the f32 path: bf16 rounding can flip argmax
    # on near-ties.

    print("KERNEL_OK")
</pallas_src>

<mosaic_0001>
module attributes {stable_mosaic.version = 11 : i64} {
  func.func @_ver2a_kernel(%arg0: i32, %arg1: i32, %arg2: memref<2x8x128xf32, #tpu.memory_space<vmem>>, %arg3: memref<2x8x128xf32, #tpu.memory_space<vmem>>, %arg4: memref<128x128xf32, #tpu.memory_space<vmem>>, %arg5: memref<1x128xf32, #tpu.memory_space<vmem>>, %arg6: memref<128x128xf32, #tpu.memory_space<vmem>>, %arg7: memref<2x128xf32, #tpu.memory_space<vmem>>, %arg8: memref<2x128xf32, #tpu.memory_space<vmem>>) attributes {dimension_semantics = [#tpu.dimension_semantics<parallel>, #tpu.dimension_semantics<arbitrary>], iteration_bounds = array<i64: 1, 1>, scalar_prefetch = 0 : i64, scratch_operands = 1 : i64, tpu.core_type = #tpu.core_type<tc>, window_params = [{transform_indices = @transform_0, window_bounds = array<i64: 2, 8, 128>}, {transform_indices = @transform_1, window_bounds = array<i64: 2, 8, 128>}, {pipeline_mode = #tpu.pipeline_mode<synchronous>, transform_indices = @transform_2, window_bounds = array<i64: 128, 128>}, {pipeline_mode = #tpu.pipeline_mode<synchronous>, transform_indices = @transform_3, window_bounds = array<i64: 1, 128>}, {pipeline_mode = #tpu.pipeline_mode<synchronous>, transform_indices = @transform_4, window_bounds = array<i64: 128, 128>}, {transform_indices = @transform_5, window_bounds = array<i64: 2, 128>}]} {
    %c0_i32 = arith.constant 0 : i32
    %0 = arith.cmpi eq, %arg1, %c0_i32 : i32
    %1 = arith.extui %0 : i1 to i32
    %c0_i32_0 = arith.constant 0 : i32
    %2 = arith.cmpi ne, %1, %c0_i32_0 : i32
    scf.if %2 {
      %cst_35 = arith.constant 0.000000e+00 : f32
      %62 = vector.broadcast %cst_35 : f32 to vector<2x128xf32>
      %c0_36 = arith.constant 0 : index
      %c0_37 = arith.constant 0 : index
      %63 = vector.load %arg8[%c0_36, %c0_37] : memref<2x128xf32, #tpu.memory_space<vmem>>, vector<2x128xf32>
      tpu.vector_store %arg8[%c0_36, %c0_37], %62 {strides = array<i32>} : memref<2x128xf32, #tpu.memory_space<vmem>>, vector<2x128xf32>,
    } else {
    }
    %c0 = arith.constant 0 : index
    %c0_1 = arith.constant 0 : index
    %3 = vector.load %arg8[%c0, %c0_1] : memref<2x128xf32, #tpu.memory_space<vmem>>, vector<2x128xf32>
    %c0_2 = arith.constant 0 : index
    %c0_3 = arith.constant 0 : index
    %c0_4 = arith.constant 0 : index
    %4 = vector.load %arg2[%c0_2, %c0_3, %c0_4] : memref<2x8x128xf32, #tpu.memory_space<vmem>>, vector<2x8x128xf32>
    %5 = vector.shape_cast %4 : vector<2x8x128xf32> to vector<16x128xf32>
    %6 = arith.mulf %5, %5 : vector<16x128xf32>
    %cst = arith.constant dense<0.000000e+00> : vector<16xf32>
    %7 = vector.multi_reduction <add>, %6, %cst [1] : vector<16x128xf32> to vector<16xf32>
    %8 = vector.shape_cast %7 : vector<16xf32> to vector<16x1xf32>
    %cst_5 = arith.constant 1.000000e-24 : f32
    %9 = vector.broadcast %cst_5 : f32 to vector<16x1xf32>
    %10 = arith.maximumf %8, %9 : vector<16x1xf32>
    %11 = math.rsqrt %10 : vector<16x1xf32>
    %12 = vector.broadcast %11 : vector<16x1xf32> to vector<16x128xf32>
    %13 = arith.mulf %5, %12 : vector<16x128xf32>
    %c0_6 = arith.constant 0 : index
    %c0_7 = arith.constant 0 : index
    %14 = vector.load %arg4[%c0_6, %c0_7] : memref<128x128xf32, #tpu.memory_space<vmem>>, vector<128x128xf32>
    %cst_8 = arith.constant dense<0.000000e+00> : vector<16x128xf32>
    %15 = tpu.matmul %13, %14, %cst_8 {dimension_numbers = #tpu.dot_dimension_numbers<[1], [0], [0], [1], [0, 0, 1, 1], [], []>} : vector<16x128xf32>, vector<128x128xf32>, vector<16x128xf32> -> vector<16x128xf32>
    %c0_9 = arith.constant 0 : index
    %c0_10 = arith.constant 0 : index
    %16 = vector.load %arg5[%c0_9, %c0_10] : memref<1x128xf32, #tpu.memory_space<vmem>>, vector<1x128xf32>
    %17 = vector.broadcast %16 : vector<1x128xf32> to vector<16x128xf32>
    %18 = arith.addf %15, %17 : vector<16x128xf32>
    %19 = arith.mulf %18, %18 : vector<16x128xf32>
    %cst_11 = arith.constant dense<0.000000e+00> : vector<16xf32>
    %20 = vector.multi_reduction <add>, %19, %cst_11 [1] : vector<16x128xf32> to vector<16xf32>
    %21 = vector.shape_cast %20 : vector<16xf32> to vector<16x1xf32>
    %cst_12 = arith.constant 1.000000e-24 : f32
    %22 = vector.broadcast %cst_12 : f32 to vector<16x1xf32>
    %23 = arith.maximumf %21, %22 : vector<16x1xf32>
    %24 = math.rsqrt %23 : vector<16x1xf32>
    %25 = vector.broadcast %24 : vector<16x1xf32> to vector<16x128xf32>
    %26 = arith.mulf %18, %25 : vector<16x128xf32>
    %27 = vector.shape_cast %26 : vector<16x128xf32> to vector<2x8x128xf32>
    %cst_13 = arith.constant dense<0.000000e+00> : vector<2x128xf32>
    %28 = vector.multi_reduction <add>, %27, %cst_13 [1] : vector<2x8x128xf32> to vector<2x128xf32>
    %29 = arith.addf %3, %28 : vector<2x128xf32>
    %c0_14 = arith.constant 0 : index
    %c0_15 = arith.constant 0 : index
    %30 = vector.load %arg8[%c0_14, %c0_15] : memref<2x128xf32, #tpu.memory_space<vmem>>, vector<2x128xf32>
    tpu.vector_store %arg8[%c0_14, %c0_15], %29 {strides = array<i32>} : memref<2x128xf32, #tpu.memory_space<vmem>>, vector<2x128xf32>,
    %c0_16 = arith.constant 0 : index
    %c0_17 = arith.constant 0 : index
    %31 = vector.load %arg8[%c0_16, %c0_17] : memref<2x128xf32, #tpu.memory_space<vmem>>, vector<2x128xf32>
    %c0_18 = arith.constant 0 : index
    %c0_19 = arith.constant 0 : index
    %c0_20 = arith.constant 0 : index
    %32 = vector.load %arg3[%c0_18, %c0_19, %c0_20] : memref<2x8x128xf32, #tpu.memory_space<vmem>>, vector<2x8x128xf32>
    %33 = vector.shape_cast %32 : vector<2x8x128xf32> to vector<16x128xf32>
    %34 = arith.mulf %33, %33 : vector<16x128xf32>
    %cst_21 = arith.constant dense<0.000000e+00> : vector<16xf32>
    %35 = vector.multi_reduction <add>, %34, %cst_21 [1] : vector<16x128xf32> to vector<16xf32>
    %36 = vector.shape_cast %35 : vector<16xf32> to vector<16x1xf32>
    %cst_22 = arith.constant 1.000000e-24 : f32
    %37 = vector.broadcast %cst_22 : f32 to vector<16x1xf32>
    %38 = arith.maximumf %36, %37 : vector<16x1xf32>
    %39 = math.rsqrt %38 : vector<16x1xf32>
    %40 = vector.broadcast %39 : vector<16x1xf32> to vector<16x128xf32>
    %41 = arith.mulf %33, %40 : vector<16x128xf32>
    %c0_23 = arith.constant 0 : index
    %c0_24 = arith.constant 0 : index
    %42 = vector.load %arg4[%c0_23, %c0_24] : memref<128x128xf32, #tpu.memory_space<vmem>>, vector<128x128xf32>
    %cst_25 = arith.constant dense<0.000000e+00> : vector<16x128xf32>
    %43 = tpu.matmul %41, %42, %cst_25 {dimension_numbers = #tpu.dot_dimension_numbers<[1], [0], [0], [1], [0, 0, 1, 1], [], []>} : vector<16x128xf32>, vector<128x128xf32>, vector<16x128xf32> -> vector<16x128xf32>
    %c0_26 = arith.constant 0 : index
    %c0_27 = arith.constant 0 : index
    %44 = vector.load %arg5[%c0_26, %c0_27] : memref<1x128xf32, #tpu.memory_space<vmem>>, vector<1x128xf32>
    %45 = vector.broadcast %44 : vector<1x128xf32> to vector<16x128xf32>
    %46 = arith.addf %43, %45 : vector<16x128xf32>
    %47 = arith.mulf %46, %46 : vector<16x128xf32>
    %cst_28 = arith.constant dense<0.000000e+00> : vector<16xf32>
    %48 = vector.multi_reduction <add>, %47, %cst_28 [1] : vector<16x128xf32> to vector<16xf32>
    %49 = vector.shape_cast %48 : vector<16xf32> to vector<16x1xf32>
    %cst_29 = arith.constant 1.000000e-24 : f32
    %50 = vector.broadcast %cst_29 : f32 to vector<16x1xf32>
    %51 = arith.maximumf %49, %50 : vector<16x1xf32>
    %52 = math.rsqrt %51 : vector<16x1xf32>
    %53 = vector.broadcast %52 : vector<16x1xf32> to vector<16x128xf32>
    %54 = arith.mulf %46, %53 : vector<16x128xf32>
    %55 = vector.shape_cast %54 : vector<16x128xf32> to vector<2x8x128xf32>
    %cst_30 = arith.constant dense<0.000000e+00> : vector<2x128xf32>
    %56 = vector.multi_reduction <add>, %55, %cst_30 [1] : vector<2x8x128xf32> to vector<2x128xf32>
    %57 = arith.addf %31, %56 : vector<2x128xf32>
    %c0_31 = arith.constant 0 : index
    %c0_32 = arith.constant 0 : index
    %58 = vector.load %arg8[%c0_31, %c0_32] : memref<2x128xf32, #tpu.memory_space<vmem>>, vector<2x128xf32>
    tpu.vector_store %arg8[%c0_31, %c0_32], %57 {strides = array<i32>} : memref<2x128xf32, #tpu.memory_space<vmem>>, vector<2x128xf32>,
    %c0_i32_33 = arith.constant 0 : i32
    %59 = arith.cmpi eq, %arg1, %c0_i32_33 : i32
    %60 = arith.extui %59 : i1 to i32
    %c0_i32_34 = arith.constant 0 : i32
    %61 = arith.cmpi ne, %60, %c0_i32_34 : i32
    scf.if %61 {
      %c0_35 = arith.constant 0 : index
      %c0_36 = arith.constant 0 : index
      %62 = vector.load %arg8[%c0_35, %c0_36] : memref<2x128xf32, #tpu.memory_space<vmem>>, vector<2x128xf32>
      %c0_37 = arith.constant 0 : index
      %c0_38 = arith.constant 0 : index
      %63 = vector.load %arg6[%c0_37, %c0_38] : memref<128x128xf32, #tpu.memory_space<vmem>>, vector<128x128xf32>
      %cst_39 = arith.constant dense<0.000000e+00> : vector<2x128xf32>
      %64 = tpu.matmul %62, %63, %cst_39 {dimension_numbers = #tpu.dot_dimension_numbers<[1], [0], [0], [1], [0, 0, 1, 1], [], []>} : vector<2x128xf32>, vector<128x128xf32>, vector<2x128xf32> -> vector<2x128xf32>
      %c0_40 = arith.constant 0 : index
      %c0_41 = arith.constant 0 : index
      %65 = vector.load %arg7[%c0_40, %c0_41] : memref<2x128xf32, #tpu.memory_space<vmem>>, vector<2x128xf32>
      tpu.vector_store %arg7[%c0_40, %c0_41], %64 {strides = array<i32>} : memref<2x128xf32, #tpu.memory_space<vmem>>, vector<2x128xf32>,
    } else {
    }
    return
  }
  func.func @transform_0(%arg0: i32, %arg1: i32) -> (i32, i32, i32) {
    %c0_i32 = arith.constant 0 : i32
    %c0_i32_0 = arith.constant 0 : i32
    return %arg0, %arg1, %c0_i32 : i32, i32, i32
  }
  func.func @transform_1(%arg0: i32, %arg1: i32) -> (i32, i32, i32) {
    %c0_i32 = arith.constant 0 : i32
    %c0_i32_0 = arith.constant 0 : i32
    return %arg0, %arg1, %c0_i32 : i32, i32, i32
  }
  func.func @transform_2(%arg0: i32, %arg1: i32) -> (i32, i32) {
    %c0_i32 = arith.constant 0 : i32
    %c0_i32_0 = arith.constant 0 : i32
    %c0_i32_1 = arith.constant 0 : i32
    return %c0_i32, %c0_i32_0 : i32, i32
  }
  func.func @transform_3(%arg0: i32, %arg1: i32) -> (i32, i32) {
    %c0_i32 = arith.constant 0 : i32
    %c0_i32_0 = arith.constant 0 : i32
    %c0_i32_1 = arith.constant 0 : i32
    return %c0_i32, %c0_i32_0 : i32, i32
  }
  func.func @transform_4(%arg0: i32, %arg1: i32) -> (i32, i32) {
    %c0_i32 = arith.constant 0 : i32
    %c0_i32_0 = arith.constant 0 : i32
    %c0_i32_1 = arith.constant 0 : i32
    return %c0_i32, %c0_i32_0 : i32, i32
  }
  func.func @transform_5(%arg0: i32, %arg1: i32) -> (i32, i32) {
    %c0_i32 = arith.constant 0 : i32
    %c0_i32_0 = arith.constant 0 : i32
    return %arg0, %c0_i32 : i32, i32
  }
}

</mosaic_0001>

<bundles_post_ra>
// kernel: ver2a_forward.1
= control target key start
LH: loop header
LB: loop body
LE: loop exit
PB: predicated region body
PF: predicated region fallthrough
CT: control target
= control target key end

     0   :  { %vm676_vm0 = vmmov 0   ;;  %vm164_vm1 = vcmask 1041409   ;;  %s861_s0 = inlined_call_operand.vmem [shape: f32[2,8,128], index: 0, kind: input, shape index: {}]   ;;  %s862_s1 = inlined_call_operand.vmem [shape: f32[2,8,128], index: 1, kind: input, shape index: {}]   ;;  %s863_s2 = inlined_call_operand.vmem [shape: f32[128,128], index: 2, kind: input, shape index: {}]   ;;  %s864_s3 = inlined_call_operand.vmem [shape: f32[1,128], index: 3, kind: input, shape index: {}]   ;;  %s865_s4 = inlined_call_operand.vmem [shape: f32[128,128], index: 4, kind: input, shape index: {}]   ;;  %s866_s5 = inlined_call_operand.vmem [shape: f32[2,128], index: 5, kind: output, shape index: {}]  }
   0x1   :  { %v710_v0 = vld [vmem:[%s861_s0] sm:$0xff]  ;;  %v720_v2 = vld [vmem:[%s861_s0 + $0x8] sm:$0xff]  ;;  %v42_v9 = vld [vmem:[%s863_s2 + $0x10] sm:$0xff] }
   0x2   :  { %v715_v1 = vld [vmem:[%s862_s1] sm:$0xff]  ;;  %v28_v3 = vmul.f32 %v710_v0, %v710_v0  ;;  %v729_v5 = vld [vmem:[%s862_s1 + $0x8] sm:$0xff]  ;;  %v43_v10 = vld [vmem:[%s863_s2 + $0x18] sm:$0xff]  ;;  %v29_v11 = vmul.f32 %v720_v2, %v720_v2 }
   0x3   :  { %v172_v4 = vmul.f32 %v715_v1, %v715_v1  ;;  %v40_v6 = vld [vmem:[%s863_s2] sm:$0xff]  ;;  %v41_v7 = vld [vmem:[%s863_s2 + $0x8] sm:$0xff]  ;;  %v173_v12 = vmul.f32 %v729_v5, %v729_v5  ;;  %v571_v13 = vpack.c.bf16 %v43_v10, %v42_v9  ;;  %v46_v17 = vld [vmem:[%s863_s2 + $0x30] sm:$0xff] }
   0x4   :  { %v567_v8 = vpack.c.bf16 %v41_v7, %v40_v6  ;;  %30 = vadd.xlane.f32.xlu0 %v28_v3  ;;  %v44_v14 = vld [vmem:[%s863_s2 + $0x20] sm:$0xff]  ;;  %v45_v15 = vld [vmem:[%s863_s2 + $0x28] sm:$0xff]  ;;  %v47_v18 = vld [vmem:[%s863_s2 + $0x38] sm:$0xff] }
   0x5   :  { %174 = vadd.xlane.f32.xlu1 %v172_v4  ;;  %v575_v16 = vpack.c.bf16 %v45_v15, %v44_v14  ;;  %v579_v19 = vpack.c.bf16 %v47_v18, %v46_v17  ;;  %v48_v20 = vld [vmem:[%s863_s2 + $0x40] sm:$0xff]  ;;  %v49_v21 = vld [vmem:[%s863_s2 + $0x48] sm:$0xff]  ;;  %v50_v23 = vld [vmem:[%s863_s2 + $0x50] sm:$0xff]  ;;  %v675_v4 = vmov 0.0  }
   0x6   :  { %568 = vmatprep.subr.bf16.mxu0 %v567_v8  ;;  %600 = vmatprep.subr.bf16.mxu1 %v567_v8  ;;  %v583_v22 = vpack.c.bf16 %v49_v21, %v48_v20  ;;  %v51_v24 = vld [vmem:[%s863_s2 + $0x58] sm:$0xff]  ;;  %v52_v26 = vld [vmem:[%s863_s2 + $0x60] sm:$0xff]  ;;  %v53_v27 = vld [vmem:[%s863_s2 + $0x68] sm:$0xff]  ;;  %24 = vst [vmem:[#allocation2] sm:$0x3] %v675_v4 }
   0x7   :  { %570 = vmatpush3.bf16.msra.mxu0 %v567_v8  ;;  %602 = vmatpush3.bf16.msra.mxu1 %v567_v8  ;;  %v587_v25 = vpack.c.bf16 %v51_v24, %v50_v23  ;;  %v54_v28 = vld [vmem:[%s863_s2 + $0x70] sm:$0xff]  ;;  %v591_v29 = vpack.c.bf16 %v53_v27, %v52_v26  ;;  %v55_v30 = vld [vmem:[%s863_s2 + $0x78] sm:$0xff]  ;;  %v407_v48 = vld [vmem:[%s864_s3] ss:$0 sm:$0xff] }
   0x8   :  { %572 = vmatprep.subr.bf16.mxu0 %v571_v13  ;;  %604 = vmatprep.subr.bf16.mxu1 %v571_v13  ;;  %v595_v31 = vpack.c.bf16 %v55_v30, %v54_v28  ;;  %v316_v61 = vld [vmem:[%s865_s4] sm:$0xff]  ;;  %v317_v62 = vld [vmem:[%s865_s4 + $0x8] sm:$0xff]  ;;  %v322_v8 = vld [vmem:[%s865_s4 + $0x30] sm:$0xff] }
   0x9   :  { %32 = vadd.xlane.f32.xlu0 %v29_v11  ;;  %176 = vadd.xlane.f32.xlu1 %v173_v12  ;;  %v632_v63 = vpack.c.bf16 %v317_v62, %v316_v61  ;;  %v321_v6 = vld [vmem:[%s865_s4 + $0x28] sm:$0xff]  ;;  %v323_v9 = vld [vmem:[%s865_s4 + $0x38] sm:$0xff]  ;;  %v324_v11 = vld [vmem:[%s865_s4 + $0x40] sm:$0xff] }
   0xa   :  { %v641_v10 = vpack.c.bf16 %v323_v9, %v322_v8  ;;  %v325_v12 = vld [vmem:[%s865_s4 + $0x48] sm:$0xff]  ;;  %v326_v14 = vld [vmem:[%s865_s4 + $0x50] sm:$0xff]  ;;  %v327_v15 = vld [vmem:[%s865_s4 + $0x58] sm:$0xff] }
   0xb   :  { %574 = vmatpush3.bf16.msra.mxu0 %v571_v13  ;;  %606 = vmatpush3.bf16.msra.mxu1 %v571_v13  ;;  %v644_v13 = vpack.c.bf16 %v325_v12, %v324_v11  ;;  %v328_v17 = vld [vmem:[%s865_s4 + $0x60] sm:$0xff]  ;;  %v329_v18 = vld [vmem:[%s865_s4 + $0x68] sm:$0xff]  ;;  %v330_v20 = vld [vmem:[%s865_s4 + $0x70] sm:$0xff] }
   0xc   :  { %576 = vmatprep.subr.bf16.mxu0 %v575_v16  ;;  %608 = vmatprep.subr.bf16.mxu1 %v575_v16  ;;  %v331_v21 = vld [vmem:[%s865_s4 + $0x78] sm:$0xff] }
   0xf   :  { %578 = vmatpush3.bf16.msra.mxu0 %v575_v16  ;;  %610 = vmatpush3.bf16.msra.mxu1 %v575_v16  ;;  %v647_v16 = vpack.c.bf16 %v327_v15, %v326_v14 }
  0x10   :  { %580 = vmatprep.subr.bf16.mxu0 %v579_v19  ;;  %612 = vmatprep.subr.bf16.mxu1 %v579_v19 }
  0x13   :  { %582 = vmatpush3.bf16.msra.mxu0 %v579_v19  ;;  %614 = vmatpush3.bf16.msra.mxu1 %v579_v19  ;;  %v650_v19 = vpack.c.bf16 %v329_v18, %v328_v17 }
  0x14   :  { %584 = vmatprep.subr.bf16.mxu0 %v583_v22  ;;  %616 = vmatprep.subr.bf16.mxu1 %v583_v22 }
  0x17   :  { %586 = vmatpush3.bf16.msra.mxu0 %v583_v22  ;;  %618 = vmatpush3.bf16.msra.mxu1 %v583_v22  ;;  %v653_v22 = vpack.c.bf16 %v331_v21, %v330_v20 }
  0x18   :  { %588 = vmatprep.subr.bf16.mxu0 %v587_v25  ;;  %620 = vmatprep.subr.bf16.mxu1 %v587_v25 }
  0x1b   :  { %590 = vmatpush3.bf16.msra.mxu0 %v587_v25  ;;  %622 = vmatpush3.bf16.msra.mxu1 %v587_v25 }
  0x1c   :  { %592 = vmatprep.subr.bf16.mxu0 %v591_v29  ;;  %624 = vmatprep.subr.bf16.mxu1 %v591_v29 }
  0x1f   :  { %594 = vmatpush3.bf16.msra.mxu0 %v591_v29  ;;  %626 = vmatpush3.bf16.msra.mxu1 %v591_v29 }
  0x20   :  { %596 = vmatprep.subr.bf16.mxu0 %v595_v31  ;;  %628 = vmatprep.subr.bf16.mxu1 %v595_v31 }
  0x23   :  { %598 = vmatpush3.bf16.msra.mxu0 %v595_v31  ;;  %630 = vmatpush3.bf16.msra.mxu1 %v595_v31 }
  0x91   :  { %v31_v32 = vpop.xlane.xlu0 %30 }
  0x92   :  { %v175_v33 = vpop.xlane.xlu1 %174  ;;  %v34_v34 = vmax.f32 %v31_v32, 1e-24 }
  0x93   :  { %v178_v35 = vmax.f32 %v175_v33, 1e-24 }
  0x94   :  { %658 = vrsqrt.f32 %v34_v34 }
  0x95   :  { %660 = vrsqrt.f32 %v178_v35 }
  0x96   :  { %v33_v36 = vpop.xlane.xlu0 %32  ;;  %v177_v37 = vpop.xlane.xlu1 %176 }
  0x97   :  { %v35_v38 = vmax.f32 %v33_v36, 1e-24  ;;  %v179_v39 = vmax.f32 %v177_v37, 1e-24 }
  0x99   :  { %662 = vrsqrt.f32 %v35_v38 }
  0x9a   :  { %664 = vrsqrt.f32 %v179_v39 }
  0x9e   :  { %v659_v40 = vpop.eup %658 }
  0x9f   :  { %v661_v41 = vpop.eup %660  ;;  %v38_v42 = vmul.f32 %v659_v40, %v710_v0  ;;  %v674_v0 = vmov 0.0|0.0  }
  0xa0   :  { %v182_v43 = vmul.f32 %v661_v41, %v715_v1  ;;  %631 = vmatprep.subr.bf16.mxu0 %v674_v0  ;;  %v318_v1 = vld [vmem:[%s865_s4 + $0x10] sm:$0xff] }
  0xa1   :  { %494 = vmatprep.mubr.f32.mxu0 %v38_v42 }
  0xa2   :  { %529 = vmatprep.mubr.f32.mxu1 %v182_v43 }
  0xa3   :  { %v663_v44 = vpop.eup %662 }
  0xa4   :  { %v665_v45 = vpop.eup %664  ;;  %v39_v46 = vmul.f32 %v663_v44, %v720_v2  ;;  %v319_v2 = vld [vmem:[%s865_s4 + $0x18] sm:$0xff] }
  0xa5   :  { %v183_v47 = vmul.f32 %v665_v45, %v729_v5  ;;  %v635_v3 = vpack.c.bf16 %v319_v2, %v318_v1  ;;  %v320_v5 = vld [vmem:[%s865_s4 + $0x20] sm:$0xff] }
  0xa6   :  { %495 = vmatmul.mubr.f32.vlgmr.msra.gmra.mrb[0].mxu0 %v39_v46  ;;  %v638_v7 = vpack.c.bf16 %v321_v6, %v320_v5 }
  0xa7   :  { %530 = vmatmul.mubr.f32.vlgmr.msra.gmra.mrb[0].mxu1 %v183_v47  ;;  %633 = vmatpush3.bf16.msra.mxu0 %v632_v63 }
  0xa8   :  { %634 = vmatprep.subr.bf16.mxu0 %v674_v0  ;;  %564 = vmatprep.mubr.msk.f32.mxu0 %vm676_vm0, %v675_v4 }
  0xab   :  { %636 = vmatpush3.bf16.msra.mxu0 %v635_v3 }
  0xac   :  { %637 = vmatprep.subr.bf16.mxu0 %v674_v0 }
  0xaf   :  { %639 = vmatpush3.bf16.msra.mxu0 %v638_v7 }
  0xb0   :  { %640 = vmatprep.subr.bf16.mxu0 %v674_v0 }
  0xb3   :  { %642 = vmatpush3.bf16.msra.mxu0 %v641_v10 }
  0xb4   :  { %643 = vmatprep.subr.bf16.mxu0 %v674_v0 }
  0xb7   :  { %645 = vmatpush3.bf16.msra.mxu0 %v644_v13 }
  0xb8   :  { %646 = vmatprep.subr.bf16.mxu0 %v674_v0 }
  0xbb   :  { %648 = vmatpush3.bf16.msra.mxu0 %v647_v16 }
  0xbc   :  { %649 = vmatprep.subr.bf16.mxu0 %v674_v0 }
  0xbf   :  { %651 = vmatpush3.bf16.msra.mxu0 %v650_v19 }
  0xc0   :  { %652 = vmatprep.subr.bf16.mxu0 %v674_v0 }
  0xc3   :  { %654 = vmatpush3.bf16.msra.mxu0 %v653_v22 }
 0x179   :  { %v496_v49 = vpop.f32.mrb[0].mxu0 }
 0x17a   :  { %v790_v50 = vadd.f32 %v496_v49, %v407_v48  ;;  %v129_v51 = vpop.f32.mrb[1].mxu0  ;;  %v531_v52 = vpop.f32.mrb[0].mxu1 }
 0x17b   :  { %v792_v53 = vadd.f32 %v407_v48, %v129_v51  ;;  %v794_v54 = vadd.f32 %v531_v52, %v407_v48  ;;  %v273_v55 = vpop.f32.mrb[1].mxu1 }
 0x17c   :  { %v796_v56 = vadd.f32 %v407_v48, %v273_v55  ;;  %v139_v57 = vmul.f32 %v790_v50, %v790_v50 }
 0x17d   :  { %v138_v58 = vmul.f32 %v792_v53, %v792_v53  ;;  %v283_v59 = vmul.f32 %v794_v54, %v794_v54 }
 0x17e   :  { %142 = vadd.xlane.f32.xlu1 %v139_v57  ;;  %v282_v60 = vmul.f32 %v796_v56, %v796_v56 }
 0x17f   :  { %140 = vadd.xlane.f32.xlu0 %v138_v58 }
 0x182   :  { %286 = vadd.xlane.f32.xlu1 %v283_v59 }
 0x183   :  { %284 = vadd.xlane.f32.xlu0 %v282_v60 }
 0x20b   :  { %v143_v23 = vpop.xlane.xlu1 %142 }
 0x20c   :  { %v145_v24 = vmax.f32 %v143_v23, 1e-24  ;;  %v141_v25 = vpop.xlane.xlu0 %140 }
 0x20d   :  { %v144_v26 = vmax.f32 %v141_v25, 1e-24 }
 0x20e   :  { %666 = vrsqrt.f32 %v145_v24 }
 0x20f   :  { %668 = vrsqrt.f32 %v144_v26  ;;  %v287_v27 = vpop.xlane.xlu1 %286 }
 0x210   :  { %v289_v28 = vmax.f32 %v287_v27, 1e-24  ;;  %v285_v29 = vpop.xlane.xlu0 %284 }
 0x211   :  { %v288_v30 = vmax.f32 %v285_v29, 1e-24 }
 0x212   :  { %670 = vrsqrt.f32 %v289_v28 }
 0x213   :  { %672 = vrsqrt.f32 %v288_v30 }
 0x218   :  { %v667_v31 = vpop.eup %666 }
 0x219   :  { %v669_v32 = vpop.eup %668  ;;  %v149_v33 = vmul.f32 %v667_v31, %v790_v50 }
 0x21a   :  { %v148_v34 = vmul.f32 %v669_v32, %v792_v53 }
 0x21b   :  { %v156_v35 = vrot.slane %v149_v33, 4 }
 0x21c   :  { %v671_v36 = vpop.eup %670  ;;  %v150_v37 = vrot.slane %v148_v34, 4 }
 0x21d   :  { %v673_v38 = vpop.eup %672  ;;  %v157_v39 = vadd.f32 %v156_v35, %v149_v33  ;;  %v293_v40 = vmul.f32 %v671_v36, %v794_v54  ;;  %v25_v54 = vld [vmem:[#allocation2] sm:$0x3] }
 0x21e   :  { %v151_v41 = vadd.f32 %v150_v37, %v148_v34  ;;  %v292_v42 = vmul.f32 %v673_v38, %v796_v56 }
 0x21f   :  { %v158_v43 = vrot.slane %v157_v39, 2  ;;  %v300_v44 = vrot.slane %v293_v40, 4 }
 0x220   :  { %v152_v45 = vrot.slane %v151_v41, 2  ;;  %v294_v46 = vrot.slane %v292_v42, 4 }
 0x221   :  { %v159_v47 = vadd.f32 %v158_v43, %v157_v39  ;;  %v301_v48 = vadd.f32 %v300_v44, %v293_v40 }
 0x222   :  { %v153_v49 = vadd.f32 %v152_v45, %v151_v41  ;;  %v295_v50 = vadd.f32 %v294_v46, %v292_v42 }
 0x223   :  { %v160_v51 = vrot.slane %v159_v47, 1  ;;  %v302_v52 = vrot.slane %v301_v48, 2 }
 0x224   :  { %v154_v53 = vrot.slane %v153_v49, 1  ;;  %v296_v55 = vrot.slane %v295_v50, 2 }
 0x225   :  { %v161_v57 = vadd.f32 %v160_v51, %v159_v47  ;;  %v303_v58 = vadd.f32 %v302_v52, %v301_v48 }
 0x226   :  { %v297_v59 = vadd.f32 %v296_v55, %v295_v50  ;;  %v155_v60 = vadd.f32 %v154_v53, %v153_v49 }
 0x227   :  { %v304_v62 = vrot.slane %v303_v58, 1 }
 0x228   :  { %v165_v61 = vsel %vm164_vm1, %v161_v57, %v155_v60  ;;  %v298_v63 = vrot.slane %v297_v59, 1 }
 0x229   :  { %v167_v56 = vadd.f32 %v165_v61, %v25_v54  ;;  %v305_v0 = vadd.f32 %v304_v62, %v303_v58 }
 0x22a   :  { %v299_v1 = vadd.f32 %v298_v63, %v297_v59 }
 0x22b   :  { %168 = vst [vmem:[#allocation2] sm:$0x3] %v167_v56 }
 0x22c   :  { %v308_v3 = vsel %vm164_vm1, %v305_v0, %v299_v1 }
 0x232   :  { %v169_v2 = vld [vmem:[#allocation2] sm:$0x3] }
 0x233   :  { %v310_v4 = vadd.f32 %v308_v3, %v169_v2 }
 0x235   :  { %311 = vst [vmem:[#allocation2] sm:$0x3] %v310_v4 }
 0x23c   :  { %v315_v5 = vld [vmem:[#allocation2] sm:$0x3] }
 0x23d   :  { %565 = vmatmul.mubr.f32.vlgmr.msra.gmra.mrb[2].mxu0 %v315_v5 }
 0x310   :  { %v398_v6 = vpop.f32.mrb[2].mxu0 }
 0x311   :  { %402 = vst [vmem:[%s866_s5] sm:$0x3] %v398_v6  ;;  %v566_v7 = vpop.f32.mrb[3].mxu0 }

</bundles_post_ra>
